<compile_context>
chip_gen: v7x
topology: tpu7x:2x2x1
jax: 0.10.0
libtpu: 0.0.40
codegen_flags: <defaults>
</compile_context>

<pallas_src>
import functools

import jax
import jax.numpy as jnp
from jax.experimental import pallas as pl
from jax.experimental.pallas import tpu as pltpu


# ---------------------------------------------------------------------------
# Pallas kernel: fused 3-layer MLP (swish hidden, identity last).
# Input concat and output split are fused; optional residual add for predict().
# ---------------------------------------------------------------------------
def _rdyn_kernel(s_ref, a_ref, w1_ref, b1_ref, w2_ref, b2_ref, w3_ref, b3_ref,
                 out_ref, *, od, residual):
    s = s_ref[...]
    a = a_ref[...]

    # Layer 1: concat fused in-register (S+A lanes fit inside one vreg), single MXU pass.
    x = jnp.concatenate([s, a], axis=-1).astype(w1_ref.dtype)
    h1 = (jnp.dot(x, w1_ref[...], preferred_element_type=jnp.float32)
          + b1_ref[...].astype(jnp.float32))
    h1 = h1 * jax.nn.sigmoid(h1)                     # swish / SiLU, f32 on EUP
    h1 = h1.astype(w2_ref.dtype)

    # Layer 2: swish(h1 @ W2 + b2)
    h2 = (jnp.dot(h1, w2_ref[...], preferred_element_type=jnp.float32)
          + b2_ref[...].astype(jnp.float32))
    h2 = h2 * jax.nn.sigmoid(h2)
    h2 = h2.astype(w3_ref.dtype)

    # Layer 3: ONE matmul over the combined (diff_states | rewards) width, identity
    # activation, single lane-contiguous output slab.
    y = (jnp.dot(h2, w3_ref[...], preferred_element_type=jnp.float32)
         + b3_ref[...].astype(jnp.float32))

    out_ref[...] = y.astype(out_ref.dtype)
    if residual:
        # predict(): next_states = states + diff_states, fused in the epilogue
        # (overwrite of the first `od` lanes; rewards columns untouched).
        out_ref[:, :od] = (y[:, :od] + s.astype(jnp.float32)).astype(out_ref.dtype)


def _round_up(x, m):
    return ((x + m - 1) // m) * m


@functools.partial(jax.jit, static_argnames=("od", "residual", "block_b"))
def _rdynamics_apply(states, actions, kernel_params, *, od, residual=False,
                     block_b=2048):
    """Fused forward. Returns (diff_or_next_states, rewards)."""
    w1, b1, w2, b2, w3, b3 = kernel_params
    B, S = states.shape
    A = actions.shape[1]
    H1 = w1.shape[1]
    H2 = w2.shape[1]
    O = w3.shape[1]            # output_state_dim + reward_dim
    assert 0 < od <= O

    # Batch tile selection:
    #   * small batches run as a single grid step (block == full array, no (8,128) issue)
    #   * large batches use big tiles (per-row VMEM footprint is tiny) but always at
    #     least 2 grid steps so "parallel" semantics shards across v7x's two TCs.
    if B <= 1024:
        tm = B
    else:
        tm = min(block_b, _round_up(pl.cdiv(B, 2), 8))
    grid = (pl.cdiv(B, tm),)

    def row_spec(feat):
        return pl.BlockSpec((tm, feat), lambda i: (i, 0))

    def resident_spec(shape):
        return pl.BlockSpec(shape, lambda i: (0,) * len(shape))

    itemsize = jnp.dtype(states.dtype).itemsize
    param_bytes = sum(int(p.size) * jnp.dtype(p.dtype).itemsize for p in kernel_params)
    cost = pl.CostEstimate(
        flops=2 * B * ((S + A) * H1 + H1 * H2 + H2 * O),
        transcendentals=B * (H1 + H2),
        bytes_accessed=B * (S + A + O) * itemsize + param_bytes,
    )

    kernel = functools.partial(_rdyn_kernel, od=od, residual=residual)
    out = pl.pallas_call(
        kernel,
        out_shape=jax.ShapeDtypeStruct((B, O), states.dtype),
        grid=grid,
        in_specs=[
            row_spec(S), row_spec(A),
            resident_spec(w1.shape), resident_spec(b1.shape),
            resident_spec(w2.shape), resident_spec(b2.shape),
            resident_spec(w3.shape), resident_spec(b3.shape),
        ],
        out_specs=row_spec(O),
        compiler_params=pltpu.CompilerParams(
            dimension_semantics=("parallel",),   # megacore sharding on v7x (grid >= 2)
            vmem_limit_bytes=32 * 1024 * 1024,   # raise v5e's 16 MiB default for big tiles
        ),
        cost_estimate=cost,
    )(states, actions, w1, b1, w2, b2, w3, b3)

    # Output split fused into the jitted wrapper (cheap slice of the lane-contiguous slab).
    return out[:, :od], out[:, od:]


# ---------------------------------------------------------------------------
# RDynamics module (parameters + forward / predict glue).
# ---------------------------------------------------------------------------
class RDynamics:
    def __init__(self, state_dim, action_dim, reward_dim, hidden_dims,
                 output_state_dim=None, key=None, dtype=jnp.float32):
        self.state_dim = state_dim
        self.action_dim = action_dim
        self.reward_dim = reward_dim
        self.output_state_dim = output_state_dim or state_dim

        in_dim = state_dim + action_dim
        out_dim = self.output_state_dim + reward_dim
        dims = [in_dim] + list(hidden_dims) + [out_dim]
        assert len(hidden_dims) == 2, "kernel is fused for 2 hidden layers"

        if key is None:
            key = jax.random.PRNGKey(0)
        keys = jax.random.split(key, len(dims) - 1)

        # truncated_norm_init: truncated normal, std = 1/(2*sqrt(fan_in)); biases zero.
        params = []
        for k, fan_in, fan_out in zip(keys, dims[:-1], dims[1:]):
            std = 1.0 / (2.0 * float(fan_in) ** 0.5)
            w = (jax.random.truncated_normal(
                k, -2.0, 2.0, (fan_in, fan_out), dtype=jnp.float32) * std).astype(dtype)
            b = jnp.zeros((1, fan_out), dtype=dtype)  # kept 2D for TPU layout
            params.append((w, b))
        self.params = params  # PyTorch-style [(W1,b1),(W2,b2),(W3,b3)], W is [in,out]

        # Unsplit weights feed the kernel directly; concat/split are fused in-kernel
        # and in the jitted wrapper, so no pre-splitting is needed anymore.
        (w1, b1), (w2, b2), (w3, b3) = params
        self._kernel_params = (w1, b1, w2, b2, w3, b3)

    def forward(self, states, actions):
        diff_states, rewards = _rdynamics_apply(
            states, actions, self._kernel_params,
            od=self.output_state_dim, residual=False)
        return {"diff_states": diff_states, "rewards": rewards}

    def predict(self, states, actions):
        if self.output_state_dim == self.state_dim:
            # residual add fused into the kernel epilogue
            next_states, rewards = _rdynamics_apply(
                states, actions, self._kernel_params,
                od=self.output_state_dim, residual=True)
            return {"next_states": next_states, "rewards": rewards}
        out = self.forward(states, actions)
        return {"next_states": states + out["diff_states"], "rewards": out["rewards"]}

    # TODO(synk): compute_l2_loss (training-time weight decay) is not part of the
    # forward pass and is intentionally not kernelized.


# ---------------------------------------------------------------------------
if __name__ == "__main__":
    state_dim, action_dim, reward_dim = 16, 8, 1
    hidden_dims = [32, 32]
    batch = 8

    key = jax.random.PRNGKey(0)
    k_states, k_actions, k_params = jax.random.split(key, 3)
    states = jax.random.normal(k_states, (batch, state_dim), dtype=jnp.float32)
    actions = jax.random.normal(k_actions, (batch, action_dim), dtype=jnp.float32)

    model = RDynamics(state_dim, action_dim, reward_dim, hidden_dims, key=k_params)

    out = model.forward(states, actions)
    pred = model.predict(states, actions)
    jax.block_until_ready(out)
    jax.block_until_ready(pred)

    # shape semantics match the PyTorch module
    assert out["diff_states"].shape == (batch, state_dim)
    assert out["rewards"].shape == (batch, reward_dim)
    assert pred["next_states"].shape == (batch, state_dim)
    assert pred["rewards"].shape == (batch, reward_dim)

    # pure-JAX reference (un-fused) for numerical correctness
    (w1, b1), (w2, b2), (w3, b3) = model.params
    x = jnp.concatenate([states, actions], axis=-1)
    h1 = x @ w1 + b1
    h1 = h1 * jax.nn.sigmoid(h1)
    h2 = h1 @ w2 + b2
    h2 = h2 * jax.nn.sigmoid(h2)
    y = h2 @ w3 + b3
    ref_diff = y[:, :model.output_state_dim]
    ref_rew = y[:, model.output_state_dim:]

    assert jnp.allclose(out["diff_states"], ref_diff, rtol=1e-5, atol=1e-5)
    assert jnp.allclose(out["rewards"], ref_rew, rtol=1e-5, atol=1e-5)
    assert jnp.allclose(pred["next_states"], states + ref_diff, rtol=1e-5, atol=1e-5)
    assert jnp.allclose(pred["rewards"], ref_rew, rtol=1e-5, atol=1e-5)

    print("KERNEL_OK")
</pallas_src>

<mosaic_0001>
module attributes {stable_mosaic.version = 11 : i64} {
  func.func @_rdyn_kernel(%arg0: i32, %arg1: memref<8x16xf32, #tpu.memory_space<vmem>>, %arg2: memref<8x8xf32, #tpu.memory_space<vmem>>, %arg3: memref<24x32xf32, #tpu.memory_space<vmem>>, %arg4: memref<1x32xf32, #tpu.memory_space<vmem>>, %arg5: memref<32x32xf32, #tpu.memory_space<vmem>>, %arg6: memref<1x32xf32, #tpu.memory_space<vmem>>, %arg7: memref<32x17xf32, #tpu.memory_space<vmem>>, %arg8: memref<1x17xf32, #tpu.memory_space<vmem>>, %arg9: memref<8x17xf32, #tpu.memory_space<vmem>>) attributes {dimension_semantics = [#tpu.dimension_semantics<parallel>], iteration_bounds = array<i64: 1>, scalar_prefetch = 0 : i64, scratch_operands = 0 : i64, tpu.core_type = #tpu.core_type<tc>, window_params = [{transform_indices = @transform_0, window_bounds = array<i64: 8, 16>}, {transform_indices = @transform_1, window_bounds = array<i64: 8, 8>}, {pipeline_mode = #tpu.pipeline_mode<synchronous>, transform_indices = @transform_2, window_bounds = array<i64: 24, 32>}, {pipeline_mode = #tpu.pipeline_mode<synchronous>, transform_indices = @transform_3, window_bounds = array<i64: 1, 32>}, {pipeline_mode = #tpu.pipeline_mode<synchronous>, transform_indices = @transform_4, window_bounds = array<i64: 32, 32>}, {pipeline_mode = #tpu.pipeline_mode<synchronous>, transform_indices = @transform_5, window_bounds = array<i64: 1, 32>}, {pipeline_mode = #tpu.pipeline_mode<synchronous>, transform_indices = @transform_6, window_bounds = array<i64: 32, 17>}, {pipeline_mode = #tpu.pipeline_mode<synchronous>, transform_indices = @transform_7, window_bounds = array<i64: 1, 17>}, {transform_indices = @transform_8, window_bounds = array<i64: 8, 17>}]} {
    %c0 = arith.constant 0 : index
    %c0_0 = arith.constant 0 : index
    %0 = vector.load %arg1[%c0, %c0_0] : memref<8x16xf32, #tpu.memory_space<vmem>>, vector<8x16xf32>
    %c0_1 = arith.constant 0 : index
    %c0_2 = arith.constant 0 : index
    %1 = vector.load %arg2[%c0_1, %c0_2] : memref<8x8xf32, #tpu.memory_space<vmem>>, vector<8x8xf32>
    %2 = tpu.concatenate %0, %1 in 1 : vector<8x16xf32>, vector<8x8xf32> -> vector<8x24xf32>
    %c0_3 = arith.constant 0 : index
    %c0_4 = arith.constant 0 : index
    %3 = vector.load %arg3[%c0_3, %c0_4] : memref<24x32xf32, #tpu.memory_space<vmem>>, vector<24x32xf32>
    %cst = arith.constant dense<0.000000e+00> : vector<8x32xf32>
    %4 = tpu.matmul %2, %3, %cst {dimension_numbers = #tpu.dot_dimension_numbers<[1], [0], [0], [1], [0, 0, 1, 1], [], []>} : vector<8x24xf32>, vector<24x32xf32>, vector<8x32xf32> -> vector<8x32xf32>
    %c0_5 = arith.constant 0 : index
    %c0_6 = arith.constant 0 : index
    %5 = vector.load %arg4[%c0_5, %c0_6] : memref<1x32xf32, #tpu.memory_space<vmem>>, vector<1x32xf32>
    %6 = vector.broadcast %5 : vector<1x32xf32> to vector<8x32xf32>
    %7 = arith.addf %4, %6 : vector<8x32xf32>
    %8 = arith.negf %7 : vector<8x32xf32>
    %9 = math.exp %8 : vector<8x32xf32>
    %cst_7 = arith.constant 1.000000e+00 : f32
    %10 = vector.broadcast %cst_7 : f32 to vector<8x32xf32>
    %11 = arith.addf %10, %9 : vector<8x32xf32>
    %12 = arith.divf %10, %11 : vector<8x32xf32>
    %13 = arith.mulf %7, %12 : vector<8x32xf32>
    %c0_8 = arith.constant 0 : index
    %c0_9 = arith.constant 0 : index
    %14 = vector.load %arg5[%c0_8, %c0_9] : memref<32x32xf32, #tpu.memory_space<vmem>>, vector<32x32xf32>
    %cst_10 = arith.constant dense<0.000000e+00> : vector<8x32xf32>
    %15 = tpu.matmul %13, %14, %cst_10 {dimension_numbers = #tpu.dot_dimension_numbers<[1], [0], [0], [1], [0, 0, 1, 1], [], []>} : vector<8x32xf32>, vector<32x32xf32>, vector<8x32xf32> -> vector<8x32xf32>
    %c0_11 = arith.constant 0 : index
    %c0_12 = arith.constant 0 : index
    %16 = vector.load %arg6[%c0_11, %c0_12] : memref<1x32xf32, #tpu.memory_space<vmem>>, vector<1x32xf32>
    %17 = vector.broadcast %16 : vector<1x32xf32> to vector<8x32xf32>
    %18 = arith.addf %15, %17 : vector<8x32xf32>
    %19 = arith.negf %18 : vector<8x32xf32>
    %20 = math.exp %19 : vector<8x32xf32>
    %cst_13 = arith.constant 1.000000e+00 : f32
    %21 = vector.broadcast %cst_13 : f32 to vector<8x32xf32>
    %22 = arith.addf %21, %20 : vector<8x32xf32>
    %23 = arith.divf %21, %22 : vector<8x32xf32>
    %24 = arith.mulf %18, %23 : vector<8x32xf32>
    %c0_14 = arith.constant 0 : index
    %c0_15 = arith.constant 0 : index
    %25 = vector.load %arg7[%c0_14, %c0_15] : memref<32x17xf32, #tpu.memory_space<vmem>>, vector<32x17xf32>
    %cst_16 = arith.constant dense<0.000000e+00> : vector<8x17xf32>
    %26 = tpu.matmul %24, %25, %cst_16 {dimension_numbers = #tpu.dot_dimension_numbers<[1], [0], [0], [1], [0, 0, 1, 1], [], []>} : vector<8x32xf32>, vector<32x17xf32>, vector<8x17xf32> -> vector<8x17xf32>
    %c0_17 = arith.constant 0 : index
    %c0_18 = arith.constant 0 : index
    %27 = vector.load %arg8[%c0_17, %c0_18] : memref<1x17xf32, #tpu.memory_space<vmem>>, vector<1x17xf32>
    %28 = vector.broadcast %27 : vector<1x17xf32> to vector<8x17xf32>
    %29 = arith.addf %26, %28 : vector<8x17xf32>
    %c0_19 = arith.constant 0 : index
    %c0_20 = arith.constant 0 : index
    %30 = vector.load %arg9[%c0_19, %c0_20] : memref<8x17xf32, #tpu.memory_space<vmem>>, vector<8x17xf32>
    tpu.vector_store %arg9[%c0_19, %c0_20], %29 {strides = array<i32>} : memref<8x17xf32, #tpu.memory_space<vmem>>, vector<8x17xf32>,
    return
  }
  func.func @transform_0(%arg0: i32) -> (i32, i32) {
    %c0_i32 = arith.constant 0 : i32
    %c0_i32_0 = arith.constant 0 : i32
    return %arg0, %c0_i32 : i32, i32
  }
  func.func @transform_1(%arg0: i32) -> (i32, i32) {
    %c0_i32 = arith.constant 0 : i32
    %c0_i32_0 = arith.constant 0 : i32
    return %arg0, %c0_i32 : i32, i32
  }
  func.func @transform_2(%arg0: i32) -> (i32, i32) {
    %c0_i32 = arith.constant 0 : i32
    %c0_i32_0 = arith.constant 0 : i32
    %c0_i32_1 = arith.constant 0 : i32
    return %c0_i32, %c0_i32_0 : i32, i32
  }
  func.func @transform_3(%arg0: i32) -> (i32, i32) {
    %c0_i32 = arith.constant 0 : i32
    %c0_i32_0 = arith.constant 0 : i32
    %c0_i32_1 = arith.constant 0 : i32
    return %c0_i32, %c0_i32_0 : i32, i32
  }
  func.func @transform_4(%arg0: i32) -> (i32, i32) {
    %c0_i32 = arith.constant 0 : i32
    %c0_i32_0 = arith.constant 0 : i32
    %c0_i32_1 = arith.constant 0 : i32
    return %c0_i32, %c0_i32_0 : i32, i32
  }
  func.func @transform_5(%arg0: i32) -> (i32, i32) {
    %c0_i32 = arith.constant 0 : i32
    %c0_i32_0 = arith.constant 0 : i32
    %c0_i32_1 = arith.constant 0 : i32
    return %c0_i32, %c0_i32_0 : i32, i32
  }
  func.func @transform_6(%arg0: i32) -> (i32, i32) {
    %c0_i32 = arith.constant 0 : i32
    %c0_i32_0 = arith.constant 0 : i32
    %c0_i32_1 = arith.constant 0 : i32
    return %c0_i32, %c0_i32_0 : i32, i32
  }
  func.func @transform_7(%arg0: i32) -> (i32, i32) {
    %c0_i32 = arith.constant 0 : i32
    %c0_i32_0 = arith.constant 0 : i32
    %c0_i32_1 = arith.constant 0 : i32
    return %c0_i32, %c0_i32_0 : i32, i32
  }
  func.func @transform_8(%arg0: i32) -> (i32, i32) {
    %c0_i32 = arith.constant 0 : i32
    %c0_i32_0 = arith.constant 0 : i32
    return %arg0, %c0_i32 : i32, i32
  }
}

</mosaic_0001>

<bundles_post_ra>
// kernel: _rdynamics_apply.1
= control target key start
LH: loop header
LB: loop body
LE: loop exit
PB: predicated region body
PF: predicated region fallthrough
CT: control target
= control target key end

     0   :  { %13 = vsyncpa [#allocation3], 0  ;;  %s591_s0 = inlined_call_operand.hbm [shape: f32[8,16], index: 0, kind: input, shape index: {}]   ;;  %s592_s1 = inlined_call_operand.hbm [shape: f32[8,8], index: 1, kind: input, shape index: {}]   ;;  %s593_s2 = inlined_call_operand.vmem [shape: f32[24,32], index: 2, kind: input, shape index: {}]   ;;  %s594_s3 = inlined_call_operand.vmem [shape: f32[1,32], index: 3, kind: input, shape index: {}]   ;;  %s595_s4 = inlined_call_operand.vmem [shape: f32[32,32], index: 4, kind: input, shape index: {}]   ;;  %s596_s5 = inlined_call_operand.vmem [shape: f32[1,32], index: 5, kind: input, shape index: {}]   ;;  %s597_s6 = inlined_call_operand.vmem [shape: f32[32,17], index: 6, kind: input, shape index: {}]   ;;  %s598_s7 = inlined_call_operand.vmem [shape: f32[1,17], index: 7, kind: input, shape index: {}]   ;;  %s599_s8 = inlined_call_operand.vmem [shape: f32[8,17], index: 8, kind: output, shape index: {}]  }
   0x1   :  { %14 = vsyncpa [#allocation5], 0  ;;  %s466_s27 = smov [#allocation2]   ;;  %s467_s29 = smov [#allocation4]  }
   0x2   :  { %s21_s28 = sshll.u32 %s466_s27, 4  ;;  %s31_s30 = sshll.u32 %s467_s29, 4  ;;  %s22_s28 = int_to_ptr.vmem [resolvable:$true] %s21_s28  ;;  %s32_s30 = int_to_ptr.vmem [resolvable:$true] %s31_s30 }
   0x3   :  { %s418_s11 = scalar_lea.hbm %s591_s0, 128 }
   0x4   :  { %p419_p0 = scmp.ne.s32.totalorder %s591_s0, %s418_s11  ;;  %p422_p1 = scmp.lt.u32.totalorder %s418_s11, %s591_s0 }
   0x6   :  { %p424_p2 = pnand %p422_p1, %p419_p0 }
   0x8   :  { %427 = shalt.err (!%p424_p2)
}
   0x9   :  { %s428_s16 = scalar_lea.vmem %s22_s28, 128  ;;  %p433_p4 = scmp.lt.s32.totalorder %s22_s28, %s22_s28 }
   0xa   :  { %p429_p3 = scmp.ne.s32.totalorder %s22_s28, %s428_s16  ;;  %p434_p5 = scmp.lt.s32.totalorder %s428_s16, %s428_s16 }
   0xc   :  { %p435_p6 = por %p434_p5, %p433_p4 }
   0xe   :  { %p436_p7 = pnand %p435_p6, %p429_p3 }
  0x10   :  { %439 = shalt.err (!%p436_p7)
}
  0x11   :  { %24 = dma.hbm_to_vmem [thread:$0]  %s591_s0, 128, %s22_s28, [#allocation3]  }
  0x12   :  { %s440_s21 = scalar_lea.hbm %s592_s1, 128 }
  0x13   :  { %p441_p8 = scmp.ne.s32.totalorder %s592_s1, %s440_s21  ;;  %p444_p9 = scmp.lt.u32.totalorder %s440_s21, %s592_s1 }
  0x15   :  { %p446_p10 = pnand %p444_p9, %p441_p8 }
  0x17   :  { %449 = shalt.err (!%p446_p10)
}
  0x18   :  { %s450_s26 = scalar_lea.vmem %s32_s30, 128  ;;  %p455_p12 = scmp.lt.s32.totalorder %s32_s30, %s32_s30 }
  0x19   :  { %p451_p11 = scmp.ne.s32.totalorder %s32_s30, %s450_s26  ;;  %p456_p13 = scmp.lt.s32.totalorder %s450_s26, %s450_s26 }
  0x1b   :  { %p457_p0 = por %p456_p13, %p455_p12 }
  0x1d   :  { %p458_p1 = pnand %p457_p0, %p451_p11 }
  0x1f   :  { %461 = shalt.err (!%p458_p1)
}
  0x20   :  { %34 = dma.hbm_to_vmem [thread:$0]  %s592_s1, 128, %s32_s30, [#allocation5]  }
  0x21   :  { %462 = dma.done.wait [#allocation3], 128  }
  0x22   :  { %463 = vsyncadd [#allocation3], 4294967168 }
  0x23   :  { %464 = dma.done.wait [#allocation5], 128  }
  0x24   :  { %465 = vsyncadd [#allocation5], 4294967168  ;;  %v468_v0 = vmov 0.0|0.0   ;;  %vm469_vm0 = vmmov 0   ;;  %v470_v1 = vmov 0.0   ;;  %v54_v2 = vld [vmem:[#allocation4] sm:$0xff] }
  0x25   :  { %389 = vmatprep.subr.bf16.mxu0 %v468_v0  ;;  %392 = vmatprep.subr.bf16.mxu1 %v468_v0  ;;  %v61_v3 = vld [vmem:[%s593_s2] sm:$0xff]  ;;  %v62_v4 = vld [vmem:[%s593_s2 + $0x8] sm:$0xff]  ;;  %s471_s30 = smov 16   ;;  %v63_v6 = vld [vmem:[%s593_s2 + $0x10] sm:$0xff]  ;;  %vm59_vm1 = vcmask 130048   ;;  %vm71_vm2 = vcmask 195584  }
  0x26   :  { %364 = vmatprep.mubr.msk.f32.mxu0 %vm469_vm0, %v470_v1  ;;  %375 = vmatprep.mubr.msk.f32.mxu1 %vm469_vm0, %v470_v1  ;;  %v390_v5 = vpack.c.bf16 %v62_v4, %v61_v3  ;;  %v53_v7 = vld [vmem:[#allocation2] sm:$0xff]  ;;  %v153_v11 = vld [vmem:[%s595_s4 + $0x8] sm:$0xff]  ;;  %v154_v13 = vld [vmem:[%s595_s4 + $0x10] sm:$0xff]  ;;  %vm163_vm3 = vcmask 261120   ;;  %vm328_vm4 = vcmask 138240  }
  0x27   :  { %56 = vrot.lane.b32.xlu0 %v54_v2, %s471_s30  ;;  %v152_v10 = vld [vmem:[%s595_s4] sm:$0xff]  ;;  %v155_v14 = vld [vmem:[%s595_s4 + $0x18] sm:$0xff]  ;;  %v245_v26 = vld [vmem:[%s597_s6 + $0x8] sm:$0xff] }
  0x28   :  { %391 = vmatpush3.bf16.msra.mxu0 %v390_v5  ;;  %v393_v12 = vpack.c.bf16 %v153_v11, %v152_v10  ;;  %v396_v15 = vpack.c.bf16 %v155_v14, %v154_v13  ;;  %v336_v16 = vld [vmem:[%s594_s3] ss:$0 sm:$0xff]  ;;  %v246_v28 = vld [vmem:[%s597_s6 + $0x10] sm:$0xff]  ;;  %v247_v29 = vld [vmem:[%s597_s6 + $0x18] sm:$0xff] }
  0x29   :  { %362 = vmatprep.subr.mxu0 %v470_v1  ;;  %v244_v25 = vld [vmem:[%s597_s6] sm:$0xff]  ;;  %v402_v30 = vpack.c.bf16 %v247_v29, %v246_v28 }
  0x2a   :  { %394 = vmatpush3.bf16.msra.mxu1 %v393_v12  ;;  %v399_v27 = vpack.c.bf16 %v245_v26, %v244_v25  ;;  %v339_v31 = vld [vmem:[%s596_s5] ss:$0 sm:$0xff] }
  0x2b   :  { %395 = vmatprep.subr.bf16.mxu1 %v468_v0  ;;  %v342_v40 = vld [vmem:[%s598_s7] ss:$0 sm:$0xff] }
  0x2c   :  { %363 = vmatpush3.msra.mxu0 %v63_v6 }
  0x2d   :  { %398 = vmatprep.subr.bf16.mxu0 %v468_v0 }
  0x2e   :  { %397 = vmatpush3.bf16.msra.mxu1 %v396_v15 }
  0x99   :  { %v57_v8 = vpop.permute.xlu0 %56 }
  0x9a   :  { %v60_v9 = vsel %vm59_vm1, %v53_v7, %v57_v8 }
  0x9b   :  { %365 = vmatmul.mubr.msk.f32.vlgmr.msra.gmra.mrb[0].mxu0 %vm71_vm2, %v60_v9 }
  0x9c   :  { %386 = vmatprep.mubr.msk.f32.mxu0 %vm469_vm0, %v470_v1  ;;  %400 = vmatpush3.bf16.msra.mxu0 %v399_v27 }
  0x9d   :  { %401 = vmatprep.subr.bf16.mxu0 %v468_v0 }
  0xa0   :  { %403 = vmatpush3.bf16.msra.mxu0 %v402_v30 }
 0x16e   :  { %v141_v17 = vpop.f32.mrb[0].mxu0 }
 0x16f   :  { %v142_v18 = vadd.f32 %v336_v16, %v141_v17  ;;  %v366_v19 = vpop.f32.mrb[1].mxu0 }
 0x171   :  { %v338_v20 = vmul.f32 -1.442695, %v142_v18 }
 0x173   :  { %410 = vpow2.f32 %v338_v20 }
 0x17d   :  { %v411_v21 = vpop.eup %410 }
 0x17e   :  { %v148_v22 = vadd.f32 1.0, %v411_v21 }
 0x180   :  { %412 = vrcp.f32 %v148_v22 }
 0x18a   :  { %v413_v23 = vpop.eup %412 }
 0x18b   :  { %v151_v24 = vmul.f32 %v413_v23, %v142_v18 }
 0x18d   :  { %376 = vmatmul.mubr.msk.f32.vlgmr.msra.gmra.mrb[0].mxu1 %vm163_vm3, %v151_v24 }
 0x260   :  { %v233_v32 = vpop.f32.mrb[0].mxu1 }
 0x261   :  { %v234_v33 = vadd.f32 %v339_v31, %v233_v32  ;;  %v377_v34 = vpop.f32.mrb[1].mxu1 }
 0x263   :  { %v341_v35 = vmul.f32 -1.442695, %v234_v33 }
 0x265   :  { %414 = vpow2.f32 %v341_v35 }
 0x26f   :  { %v415_v36 = vpop.eup %414 }
 0x270   :  { %v240_v37 = vadd.f32 1.0, %v415_v36 }
 0x272   :  { %416 = vrcp.f32 %v240_v37 }
 0x27c   :  { %v417_v38 = vpop.eup %416 }
 0x27d   :  { %v243_v39 = vmul.f32 %v417_v38, %v234_v33 }
 0x27f   :  { %387 = vmatmul.mubr.msk.f32.vlgmr.msra.gmra.mrb[2].mxu0 %vm163_vm3, %v243_v39 }
 0x352   :  { %v324_v41 = vpop.f32.mrb[2].mxu0 }
 0x353   :  { %v325_v42 = vadd.f32 %v342_v40, %v324_v41  ;;  %v388_v43 = vpop.f32.mrb[3].mxu0 }
 0x355   :  { %329 = vst.msk [vmem:[%s599_s8] sm:$0xff] %vm328_vm4, %v325_v42 }
 0x356   :  { %334 = vsyncpa [#allocation3], 1 }
 0x357   :  { %335 = vsyncpa [#allocation5], 1 }

</bundles_post_ra>
